<compile_context>
chip_gen: v7x
topology: tpu7x:2x2x1
jax: 0.10.0
libtpu: 0.0.40
codegen_flags: <defaults>
</compile_context>

<pallas_src>
import functools

import jax
import jax.numpy as jnp
import numpy as np
from jax.experimental import pallas as pl
from jax.experimental.pallas import tpu as pltpu


def _stglstm_kernel(x_ref, m_ref, bg_ref, p_ref, bo_ref, out_ref, h_ref, *,
                    batch, cv, t_out, t_in, final_layer):
    B = batch
    CV = cv
    f32 = jnp.float32

    M = m_ref[...]                                  # (CV, 4*CV), hoisted load
    bg = bg_ref[...]                                # (1, 4*CV)

    # ---- Prologue: input-dependent gate pre-activations for ALL steps in one
    # lane-dense matmul.  gates_t = Gx_t + hx_t @ M  (linear in comb = x + hx).
    if final_layer:
        # Loop-invariant: the last time slice is reused every step.
        x_last = x_ref[(t_in - 1) * B:t_in * B, :].astype(f32)        # (B, CV)
        gx_last = jnp.dot(x_last, M, preferred_element_type=f32) + bg
        gx_all = None
    else:
        gx_all = jnp.dot(x_ref[...].astype(f32), M,
                         preferred_element_type=f32) + bg       # (T_in*B, 4CV)
        gx_last = None

    hx = jnp.zeros((B, CV), f32)
    cx = jnp.zeros((B, CV), f32)

    # ---- Serial recurrence: ONE (B, CV) @ (CV, 4*CV) matmul per step.
    # T is small & static -> full unroll.
    for t in range(t_out):
        gx_t = gx_last if final_layer else gx_all[t * B:(t + 1) * B, :]
        if t == 0:
            gates = gx_t                                         # hx == 0
        else:
            gates = gx_t + jnp.dot(hx, M, preferred_element_type=f32)

        # Gate lanes are contiguous CV-wide blocks (gate-major column order).
        ingate = jax.nn.sigmoid(gates[:, 0 * CV:1 * CV])
        forgetgate = jax.nn.sigmoid(gates[:, 1 * CV:2 * CV])
        cellgate = gates[:, 2 * CV:3 * CV]           # NB: no tanh, per spec
        outgate = jax.nn.sigmoid(gates[:, 3 * CV:4 * CV])

        cx = forgetgate * cx + ingate * cellgate
        hx = outgate * jnp.tanh(cx)

        # Park this step's hidden state in VMEM scratch (bounds live ranges).
        h_ref[t * B:(t + 1) * B, :] = hx

    # ---- Epilogue: the whole 1x1 "out" conv as ONE lane-dense matmul,
    # (T*B, CV) @ (CV, C_out*V) -> (T*B, C_out*V)   (= (16, 128) at test shapes)
    y = jnp.dot(h_ref[...], p_ref[...], preferred_element_type=f32) + bo_ref[...]
    out_ref[...] = y.astype(out_ref.dtype)


def stglstm_layer(x, support, wg, bg, wo, bo, *, out_len=None,
                  final_layer=False):
    """x: (B, C_in, V, T_in) f32; support: (V, V); wg: (4C, 3C); bg: (4C,);
    wo: (C_out, C_in); bo: (C_out,).  Returns (B, C_out, V, T_out)."""
    B, C, V, T_in = x.shape
    T = T_in if out_len is None else out_len
    if not final_layer:
        assert T <= T_in
    C_out = wo.shape[0]
    CV = C * V
    f32 = jnp.float32
    hp = jax.lax.Precision.HIGHEST

    # (B, C, V, T) -> (T, B, C, V) -> (T*B, C*V): rows = (t, b), lanes = (c, v).
    x_flat = jnp.transpose(x, (3, 0, 1, 2)).reshape(T_in * B, CV).astype(f32)

    A = support.astype(f32)
    eyeV = jnp.eye(V, dtype=f32)
    A2 = jnp.dot(A, A, precision=hp)
    Aops = jnp.stack([eyeV, A, A2], axis=0)           # diffusion orders 0..2

    # Kronecker pre-composition of diffusion + gout conv (batch-independent):
    #   M[(c,v),(g,c',w)] = sum_o wg[g*C+c', o*C+c] * A^o[v,w]
    wg4 = wg.astype(f32).reshape(4, C, 3, C)          # [gate, c_out, order, c_in]
    M = jnp.einsum('gpoc,ovw->cvgpw', wg4, Aops,
                   precision=hp).reshape(CV, 4 * CV)
    bg_row = jnp.broadcast_to(bg.astype(f32).reshape(4, C, 1),
                              (4, C, V)).reshape(1, 4 * CV)

    # Final 1x1 "out" conv as a single matrix: P[(c,v),(o,w)] = wo[o,c]*I[v,w].
    P = jnp.einsum('oc,vw->cvow', wo.astype(f32), eyeV,
                   precision=hp).reshape(CV, C_out * V)
    bo_row = jnp.broadcast_to(bo.astype(f32).reshape(C_out, 1),
                              (C_out, V)).reshape(1, C_out * V)

    kernel = functools.partial(
        _stglstm_kernel, batch=B, cv=CV, t_out=T, t_in=T_in,
        final_layer=bool(final_layer))

    vmem = pl.BlockSpec(memory_space=pltpu.MemorySpace.VMEM)
    yk = pl.pallas_call(
        kernel,
        out_shape=jax.ShapeDtypeStruct((T * B, C_out * V), x.dtype),
        in_specs=[vmem] * 5,
        out_specs=vmem,
        scratch_shapes=[pltpu.VMEM((T * B, CV), jnp.float32)],
    )(x_flat, M, bg_row, P, bo_row)

    # TODO(synk): F.dropout omitted — inference semantics (training=False).
    # Kernel output rows are t*B + b, columns are o*V + v.
    return jnp.transpose(yk.reshape(T, B, C_out, V), (1, 2, 3, 0))


def stglstm_ref(x, A, wg, bg, wo, bo, out_len=None, final_layer=False):
    """Pure-JAX reference mirroring the PyTorch forward (support_len=1, order=2)."""
    B, C, V, T_in = x.shape
    T = T_in if out_len is None else out_len
    hp = jax.lax.Precision.HIGHEST
    hx = jnp.zeros((B, C, V), jnp.float32)
    cx = jnp.zeros((B, C, V), jnp.float32)
    outs = []
    for t in range(T):
        xt = x[:, :, :, T_in - 1] if final_layer else x[:, :, :, t]
        comb = xt + hx
        x1 = jnp.einsum('bcv,vw->bcw', comb, A, precision=hp)
        x2 = jnp.einsum('bcv,vw->bcw', x1, A, precision=hp)
        h = jnp.concatenate([comb, x1, x2], axis=1)
        gates = jnp.einsum('oc,bcs->bos', wg, h, precision=hp) + bg[None, :, None]
        i = jax.nn.sigmoid(gates[:, 0 * C:1 * C])
        f = jax.nn.sigmoid(gates[:, 1 * C:2 * C])
        g = gates[:, 2 * C:3 * C]
        o = jax.nn.sigmoid(gates[:, 3 * C:4 * C])
        cy = f * cx + i * g
        hy = o * jnp.tanh(cy)
        hx, cx = hy, cy
        outs.append(hy)
    out = jnp.stack(outs, axis=-1)
    return jnp.einsum('oc,bcst->bost', wo, out, precision=hp) + bo[None, :, None, None]


if __name__ == "__main__":
    B, C_in, V, T = 2, 4, 16, 8
    C_out = 8
    order, support_len = 2, 1
    gc_in = (order * support_len + 1) * C_in          # 3 * C_in

    key = jax.random.PRNGKey(0)
    ks = jax.random.split(key, 6)
    x = jax.random.normal(ks[0], (B, C_in, V, T), jnp.float32)
    A = jax.random.uniform(ks[1], (V, V), jnp.float32)
    A = A / jnp.sum(A, axis=1, keepdims=True)         # random-walk support
    wg = 0.2 * jax.random.normal(ks[2], (4 * C_in, gc_in), jnp.float32)
    bg = 0.1 * jax.random.normal(ks[3], (4 * C_in,), jnp.float32)
    wo = 0.2 * jax.random.normal(ks[4], (C_out, C_in), jnp.float32)
    bo = 0.1 * jax.random.normal(ks[5], (C_out,), jnp.float32)

    # Standard path.
    y = jax.block_until_ready(stglstm_layer(x, A, wg, bg, wo, bo))
    y_ref = stglstm_ref(x, A, wg, bg, wo, bo)
    assert y.shape == (B, C_out, V, T)
    np.testing.assert_allclose(np.asarray(y), np.asarray(y_ref),
                               rtol=1e-4, atol=1e-4)

    # final_layer / out_len path (repeatedly feeds the last time slice).
    T2 = 5
    y_fl = jax.block_until_ready(
        stglstm_layer(x, A, wg, bg, wo, bo, out_len=T2, final_layer=True))
    y_fl_ref = stglstm_ref(x, A, wg, bg, wo, bo, out_len=T2, final_layer=True)
    assert y_fl.shape == (B, C_out, V, T2)
    np.testing.assert_allclose(np.asarray(y_fl), np.asarray(y_fl_ref),
                               rtol=1e-4, atol=1e-4)

    print("KERNEL_OK")
</pallas_src>

<mosaic_0001>
module attributes {stable_mosaic.version = 11 : i64} {
  func.func @_stglstm_kernel(%arg0: memref<16x64xf32, #tpu.memory_space<vmem>>, %arg1: memref<64x256xf32, #tpu.memory_space<vmem>>, %arg2: memref<1x256xf32, #tpu.memory_space<vmem>>, %arg3: memref<64x128xf32, #tpu.memory_space<vmem>>, %arg4: memref<1x128xf32, #tpu.memory_space<vmem>>, %arg5: memref<16x128xf32, #tpu.memory_space<vmem>>, %arg6: memref<16x64xf32, #tpu.memory_space<vmem>>) attributes {dimension_semantics = [], scalar_prefetch = 0 : i64, scratch_operands = 1 : i64, tpu.core_type = #tpu.core_type<tc>} {
    %c0 = arith.constant 0 : index
    %c0_0 = arith.constant 0 : index
    %0 = vector.load %arg1[%c0, %c0_0] : memref<64x256xf32, #tpu.memory_space<vmem>>, vector<64x256xf32>
    %c0_1 = arith.constant 0 : index
    %c0_2 = arith.constant 0 : index
    %1 = vector.load %arg2[%c0_1, %c0_2] : memref<1x256xf32, #tpu.memory_space<vmem>>, vector<1x256xf32>
    %c0_3 = arith.constant 0 : index
    %c0_4 = arith.constant 0 : index
    %2 = vector.load %arg0[%c0_3, %c0_4] : memref<16x64xf32, #tpu.memory_space<vmem>>, vector<16x64xf32>
    %cst = arith.constant dense<0.000000e+00> : vector<16x256xf32>
    %3 = tpu.matmul %2, %0, %cst {dimension_numbers = #tpu.dot_dimension_numbers<[1], [0], [0], [1], [0, 0, 1, 1], [], []>} : vector<16x64xf32>, vector<64x256xf32>, vector<16x256xf32> -> vector<16x256xf32>
    %4 = vector.broadcast %1 : vector<1x256xf32> to vector<16x256xf32>
    %5 = arith.addf %3, %4 : vector<16x256xf32>
    %cst_5 = arith.constant 0.000000e+00 : f32
    %6 = vector.broadcast %cst_5 : f32 to vector<2x64xf32>
    %7 = vector.extract_strided_slice %5 {offsets = [0, 0], sizes = [2, 256], strides = [1, 1]} : vector<16x256xf32> to vector<2x256xf32>
    %8 = vector.extract_strided_slice %7 {offsets = [0, 0], sizes = [2, 64], strides = [1, 1]} : vector<2x256xf32> to vector<2x64xf32>
    %9 = arith.negf %8 : vector<2x64xf32>
    %10 = math.exp %9 : vector<2x64xf32>
    %cst_6 = arith.constant 1.000000e+00 : f32
    %11 = vector.broadcast %cst_6 : f32 to vector<2x64xf32>
    %12 = arith.addf %11, %10 : vector<2x64xf32>
    %13 = arith.divf %11, %12 : vector<2x64xf32>
    %14 = vector.extract_strided_slice %7 {offsets = [0, 64], sizes = [2, 64], strides = [1, 1]} : vector<2x256xf32> to vector<2x64xf32>
    %15 = arith.negf %14 : vector<2x64xf32>
    %16 = math.exp %15 : vector<2x64xf32>
    %cst_7 = arith.constant 1.000000e+00 : f32
    %17 = vector.broadcast %cst_7 : f32 to vector<2x64xf32>
    %18 = arith.addf %17, %16 : vector<2x64xf32>
    %19 = arith.divf %17, %18 : vector<2x64xf32>
    %20 = vector.extract_strided_slice %7 {offsets = [0, 128], sizes = [2, 64], strides = [1, 1]} : vector<2x256xf32> to vector<2x64xf32>
    %21 = vector.extract_strided_slice %7 {offsets = [0, 192], sizes = [2, 64], strides = [1, 1]} : vector<2x256xf32> to vector<2x64xf32>
    %22 = arith.negf %21 : vector<2x64xf32>
    %23 = math.exp %22 : vector<2x64xf32>
    %cst_8 = arith.constant 1.000000e+00 : f32
    %24 = vector.broadcast %cst_8 : f32 to vector<2x64xf32>
    %25 = arith.addf %24, %23 : vector<2x64xf32>
    %26 = arith.divf %24, %25 : vector<2x64xf32>
    %27 = arith.mulf %19, %6 : vector<2x64xf32>
    %28 = arith.mulf %13, %20 : vector<2x64xf32>
    %29 = arith.addf %27, %28 : vector<2x64xf32>
    %30 = math.tanh %29 : vector<2x64xf32>
    %31 = arith.mulf %26, %30 : vector<2x64xf32>
    %c0_9 = arith.constant 0 : index
    %c0_10 = arith.constant 0 : index
    %32 = vector.load %arg6[%c0_9, %c0_10] : memref<16x64xf32, #tpu.memory_space<vmem>>, vector<2x64xf32>
    tpu.vector_store %arg6[%c0_9, %c0_10], %31 {strides = array<i32>} : memref<16x64xf32, #tpu.memory_space<vmem>>, vector<2x64xf32>,
    %33 = vector.extract_strided_slice %5 {offsets = [2, 0], sizes = [2, 256], strides = [1, 1]} : vector<16x256xf32> to vector<2x256xf32>
    %cst_11 = arith.constant dense<0.000000e+00> : vector<2x256xf32>
    %34 = tpu.matmul %31, %0, %cst_11 {dimension_numbers = #tpu.dot_dimension_numbers<[1], [0], [0], [1], [0, 0, 1, 1], [], []>} : vector<2x64xf32>, vector<64x256xf32>, vector<2x256xf32> -> vector<2x256xf32>
    %35 = arith.addf %33, %34 : vector<2x256xf32>
    %36 = vector.extract_strided_slice %35 {offsets = [0, 0], sizes = [2, 64], strides = [1, 1]} : vector<2x256xf32> to vector<2x64xf32>
    %37 = arith.negf %36 : vector<2x64xf32>
    %38 = math.exp %37 : vector<2x64xf32>
    %cst_12 = arith.constant 1.000000e+00 : f32
    %39 = vector.broadcast %cst_12 : f32 to vector<2x64xf32>
    %40 = arith.addf %39, %38 : vector<2x64xf32>
    %41 = arith.divf %39, %40 : vector<2x64xf32>
    %42 = vector.extract_strided_slice %35 {offsets = [0, 64], sizes = [2, 64], strides = [1, 1]} : vector<2x256xf32> to vector<2x64xf32>
    %43 = arith.negf %42 : vector<2x64xf32>
    %44 = math.exp %43 : vector<2x64xf32>
    %cst_13 = arith.constant 1.000000e+00 : f32
    %45 = vector.broadcast %cst_13 : f32 to vector<2x64xf32>
    %46 = arith.addf %45, %44 : vector<2x64xf32>
    %47 = arith.divf %45, %46 : vector<2x64xf32>
    %48 = vector.extract_strided_slice %35 {offsets = [0, 128], sizes = [2, 64], strides = [1, 1]} : vector<2x256xf32> to vector<2x64xf32>
    %49 = vector.extract_strided_slice %35 {offsets = [0, 192], sizes = [2, 64], strides = [1, 1]} : vector<2x256xf32> to vector<2x64xf32>
    %50 = arith.negf %49 : vector<2x64xf32>
    %51 = math.exp %50 : vector<2x64xf32>
    %cst_14 = arith.constant 1.000000e+00 : f32
    %52 = vector.broadcast %cst_14 : f32 to vector<2x64xf32>
    %53 = arith.addf %52, %51 : vector<2x64xf32>
    %54 = arith.divf %52, %53 : vector<2x64xf32>
    %55 = arith.mulf %47, %29 : vector<2x64xf32>
    %56 = arith.mulf %41, %48 : vector<2x64xf32>
    %57 = arith.addf %55, %56 : vector<2x64xf32>
    %58 = math.tanh %57 : vector<2x64xf32>
    %59 = arith.mulf %54, %58 : vector<2x64xf32>
    %c2 = arith.constant 2 : index
    %c0_15 = arith.constant 0 : index
    %60 = vector.load %arg6[%c2, %c0_15] : memref<16x64xf32, #tpu.memory_space<vmem>>, vector<2x64xf32>
    tpu.vector_store %arg6[%c2, %c0_15], %59 {strides = array<i32>} : memref<16x64xf32, #tpu.memory_space<vmem>>, vector<2x64xf32>,
    %61 = vector.extract_strided_slice %5 {offsets = [4, 0], sizes = [2, 256], strides = [1, 1]} : vector<16x256xf32> to vector<2x256xf32>
    %cst_16 = arith.constant dense<0.000000e+00> : vector<2x256xf32>
    %62 = tpu.matmul %59, %0, %cst_16 {dimension_numbers = #tpu.dot_dimension_numbers<[1], [0], [0], [1], [0, 0, 1, 1], [], []>} : vector<2x64xf32>, vector<64x256xf32>, vector<2x256xf32> -> vector<2x256xf32>
    %63 = arith.addf %61, %62 : vector<2x256xf32>
    %64 = vector.extract_strided_slice %63 {offsets = [0, 0], sizes = [2, 64], strides = [1, 1]} : vector<2x256xf32> to vector<2x64xf32>
    %65 = arith.negf %64 : vector<2x64xf32>
    %66 = math.exp %65 : vector<2x64xf32>
    %cst_17 = arith.constant 1.000000e+00 : f32
    %67 = vector.broadcast %cst_17 : f32 to vector<2x64xf32>
    %68 = arith.addf %67, %66 : vector<2x64xf32>
    %69 = arith.divf %67, %68 : vector<2x64xf32>
    %70 = vector.extract_strided_slice %63 {offsets = [0, 64], sizes = [2, 64], strides = [1, 1]} : vector<2x256xf32> to vector<2x64xf32>
    %71 = arith.negf %70 : vector<2x64xf32>
    %72 = math.exp %71 : vector<2x64xf32>
    %cst_18 = arith.constant 1.000000e+00 : f32
    %73 = vector.broadcast %cst_18 : f32 to vector<2x64xf32>
    %74 = arith.addf %73, %72 : vector<2x64xf32>
    %75 = arith.divf %73, %74 : vector<2x64xf32>
    %76 = vector.extract_strided_slice %63 {offsets = [0, 128], sizes = [2, 64], strides = [1, 1]} : vector<2x256xf32> to vector<2x64xf32>
    %77 = vector.extract_strided_slice %63 {offsets = [0, 192], sizes = [2, 64], strides = [1, 1]} : vector<2x256xf32> to vector<2x64xf32>
    %78 = arith.negf %77 : vector<2x64xf32>
    %79 = math.exp %78 : vector<2x64xf32>
    %cst_19 = arith.constant 1.000000e+00 : f32
    %80 = vector.broadcast %cst_19 : f32 to vector<2x64xf32>
    %81 = arith.addf %80, %79 : vector<2x64xf32>
    %82 = arith.divf %80, %81 : vector<2x64xf32>
    %83 = arith.mulf %75, %57 : vector<2x64xf32>
    %84 = arith.mulf %69, %76 : vector<2x64xf32>
    %85 = arith.addf %83, %84 : vector<2x64xf32>
    %86 = math.tanh %85 : vector<2x64xf32>
    %87 = arith.mulf %82, %86 : vector<2x64xf32>
    %c4 = arith.constant 4 : index
    %c0_20 = arith.constant 0 : index
    %88 = vector.load %arg6[%c4, %c0_20] : memref<16x64xf32, #tpu.memory_space<vmem>>, vector<2x64xf32>
    tpu.vector_store %arg6[%c4, %c0_20], %87 {strides = array<i32>} : memref<16x64xf32, #tpu.memory_space<vmem>>, vector<2x64xf32>,
    %89 = vector.extract_strided_slice %5 {offsets = [6, 0], sizes = [2, 256], strides = [1, 1]} : vector<16x256xf32> to vector<2x256xf32>
    %cst_21 = arith.constant dense<0.000000e+00> : vector<2x256xf32>
    %90 = tpu.matmul %87, %0, %cst_21 {dimension_numbers = #tpu.dot_dimension_numbers<[1], [0], [0], [1], [0, 0, 1, 1], [], []>} : vector<2x64xf32>, vector<64x256xf32>, vector<2x256xf32> -> vector<2x256xf32>
    %91 = arith.addf %89, %90 : vector<2x256xf32>
    %92 = vector.extract_strided_slice %91 {offsets = [0, 0], sizes = [2, 64], strides = [1, 1]} : vector<2x256xf32> to vector<2x64xf32>
    %93 = arith.negf %92 : vector<2x64xf32>
    %94 = math.exp %93 : vector<2x64xf32>
    %cst_22 = arith.constant 1.000000e+00 : f32
    %95 = vector.broadcast %cst_22 : f32 to vector<2x64xf32>
    %96 = arith.addf %95, %94 : vector<2x64xf32>
    %97 = arith.divf %95, %96 : vector<2x64xf32>
    %98 = vector.extract_strided_slice %91 {offsets = [0, 64], sizes = [2, 64], strides = [1, 1]} : vector<2x256xf32> to vector<2x64xf32>
    %99 = arith.negf %98 : vector<2x64xf32>
    %100 = math.exp %99 : vector<2x64xf32>
    %cst_23 = arith.constant 1.000000e+00 : f32
    %101 = vector.broadcast %cst_23 : f32 to vector<2x64xf32>
    %102 = arith.addf %101, %100 : vector<2x64xf32>
    %103 = arith.divf %101, %102 : vector<2x64xf32>
    %104 = vector.extract_strided_slice %91 {offsets = [0, 128], sizes = [2, 64], strides = [1, 1]} : vector<2x256xf32> to vector<2x64xf32>
    %105 = vector.extract_strided_slice %91 {offsets = [0, 192], sizes = [2, 64], strides = [1, 1]} : vector<2x256xf32> to vector<2x64xf32>
    %106 = arith.negf %105 : vector<2x64xf32>
    %107 = math.exp %106 : vector<2x64xf32>
    %cst_24 = arith.constant 1.000000e+00 : f32
    %108 = vector.broadcast %cst_24 : f32 to vector<2x64xf32>
    %109 = arith.addf %108, %107 : vector<2x64xf32>
    %110 = arith.divf %108, %109 : vector<2x64xf32>
    %111 = arith.mulf %103, %85 : vector<2x64xf32>
    %112 = arith.mulf %97, %104 : vector<2x64xf32>
    %113 = arith.addf %111, %112 : vector<2x64xf32>
    %114 = math.tanh %113 : vector<2x64xf32>
    %115 = arith.mulf %110, %114 : vector<2x64xf32>
    %c6 = arith.constant 6 : index
    %c0_25 = arith.constant 0 : index
    %116 = vector.load %arg6[%c6, %c0_25] : memref<16x64xf32, #tpu.memory_space<vmem>>, vector<2x64xf32>
    tpu.vector_store %arg6[%c6, %c0_25], %115 {strides = array<i32>} : memref<16x64xf32, #tpu.memory_space<vmem>>, vector<2x64xf32>,
    %117 = vector.extract_strided_slice %5 {offsets = [8, 0], sizes = [2, 256], strides = [1, 1]} : vector<16x256xf32> to vector<2x256xf32>
    %cst_26 = arith.constant dense<0.000000e+00> : vector<2x256xf32>
    %118 = tpu.matmul %115, %0, %cst_26 {dimension_numbers = #tpu.dot_dimension_numbers<[1], [0], [0], [1], [0, 0, 1, 1], [], []>} : vector<2x64xf32>, vector<64x256xf32>, vector<2x256xf32> -> vector<2x256xf32>
    %119 = arith.addf %117, %118 : vector<2x256xf32>
    %120 = vector.extract_strided_slice %119 {offsets = [0, 0], sizes = [2, 64], strides = [1, 1]} : vector<2x256xf32> to vector<2x64xf32>
    %121 = arith.negf %120 : vector<2x64xf32>
    %122 = math.exp %121 : vector<2x64xf32>
    %cst_27 = arith.constant 1.000000e+00 : f32
    %123 = vector.broadcast %cst_27 : f32 to vector<2x64xf32>
    %124 = arith.addf %123, %122 : vector<2x64xf32>
    %125 = arith.divf %123, %124 : vector<2x64xf32>
    %126 = vector.extract_strided_slice %119 {offsets = [0, 64], sizes = [2, 64], strides = [1, 1]} : vector<2x256xf32> to vector<2x64xf32>
    %127 = arith.negf %126 : vector<2x64xf32>
    %128 = math.exp %127 : vector<2x64xf32>
    %cst_28 = arith.constant 1.000000e+00 : f32
    %129 = vector.broadcast %cst_28 : f32 to vector<2x64xf32>
    %130 = arith.addf %129, %128 : vector<2x64xf32>
    %131 = arith.divf %129, %130 : vector<2x64xf32>
    %132 = vector.extract_strided_slice %119 {offsets = [0, 128], sizes = [2, 64], strides = [1, 1]} : vector<2x256xf32> to vector<2x64xf32>
    %133 = vector.extract_strided_slice %119 {offsets = [0, 192], sizes = [2, 64], strides = [1, 1]} : vector<2x256xf32> to vector<2x64xf32>
    %134 = arith.negf %133 : vector<2x64xf32>
    %135 = math.exp %134 : vector<2x64xf32>
    %cst_29 = arith.constant 1.000000e+00 : f32
    %136 = vector.broadcast %cst_29 : f32 to vector<2x64xf32>
    %137 = arith.addf %136, %135 : vector<2x64xf32>
    %138 = arith.divf %136, %137 : vector<2x64xf32>
    %139 = arith.mulf %131, %113 : vector<2x64xf32>
    %140 = arith.mulf %125, %132 : vector<2x64xf32>
    %141 = arith.addf %139, %140 : vector<2x64xf32>
    %142 = math.tanh %141 : vector<2x64xf32>
    %143 = arith.mulf %138, %142 : vector<2x64xf32>
    %c8 = arith.constant 8 : index
    %c0_30 = arith.constant 0 : index
    %144 = vector.load %arg6[%c8, %c0_30] : memref<16x64xf32, #tpu.memory_space<vmem>>, vector<2x64xf32>
    tpu.vector_store %arg6[%c8, %c0_30], %143 {strides = array<i32>} : memref<16x64xf32, #tpu.memory_space<vmem>>, vector<2x64xf32>,
    %145 = vector.extract_strided_slice %5 {offsets = [10, 0], sizes = [2, 256], strides = [1, 1]} : vector<16x256xf32> to vector<2x256xf32>
    %cst_31 = arith.constant dense<0.000000e+00> : vector<2x256xf32>
    %146 = tpu.matmul %143, %0, %cst_31 {dimension_numbers = #tpu.dot_dimension_numbers<[1], [0], [0], [1], [0, 0, 1, 1], [], []>} : vector<2x64xf32>, vector<64x256xf32>, vector<2x256xf32> -> vector<2x256xf32>
    %147 = arith.addf %145, %146 : vector<2x256xf32>
    %148 = vector.extract_strided_slice %147 {offsets = [0, 0], sizes = [2, 64], strides = [1, 1]} : vector<2x256xf32> to vector<2x64xf32>
    %149 = arith.negf %148 : vector<2x64xf32>
    %150 = math.exp %149 : vector<2x64xf32>
    %cst_32 = arith.constant 1.000000e+00 : f32
    %151 = vector.broadcast %cst_32 : f32 to vector<2x64xf32>
    %152 = arith.addf %151, %150 : vector<2x64xf32>
    %153 = arith.divf %151, %152 : vector<2x64xf32>
    %154 = vector.extract_strided_slice %147 {offsets = [0, 64], sizes = [2, 64], strides = [1, 1]} : vector<2x256xf32> to vector<2x64xf32>
    %155 = arith.negf %154 : vector<2x64xf32>
    %156 = math.exp %155 : vector<2x64xf32>
    %cst_33 = arith.constant 1.000000e+00 : f32
    %157 = vector.broadcast %cst_33 : f32 to vector<2x64xf32>
    %158 = arith.addf %157, %156 : vector<2x64xf32>
    %159 = arith.divf %157, %158 : vector<2x64xf32>
    %160 = vector.extract_strided_slice %147 {offsets = [0, 128], sizes = [2, 64], strides = [1, 1]} : vector<2x256xf32> to vector<2x64xf32>
    %161 = vector.extract_strided_slice %147 {offsets = [0, 192], sizes = [2, 64], strides = [1, 1]} : vector<2x256xf32> to vector<2x64xf32>
    %162 = arith.negf %161 : vector<2x64xf32>
    %163 = math.exp %162 : vector<2x64xf32>
    %cst_34 = arith.constant 1.000000e+00 : f32
    %164 = vector.broadcast %cst_34 : f32 to vector<2x64xf32>
    %165 = arith.addf %164, %163 : vector<2x64xf32>
    %166 = arith.divf %164, %165 : vector<2x64xf32>
    %167 = arith.mulf %159, %141 : vector<2x64xf32>
    %168 = arith.mulf %153, %160 : vector<2x64xf32>
    %169 = arith.addf %167, %168 : vector<2x64xf32>
    %170 = math.tanh %169 : vector<2x64xf32>
    %171 = arith.mulf %166, %170 : vector<2x64xf32>
    %c10 = arith.constant 10 : index
    %c0_35 = arith.constant 0 : index
    %172 = vector.load %arg6[%c10, %c0_35] : memref<16x64xf32, #tpu.memory_space<vmem>>, vector<2x64xf32>
    tpu.vector_store %arg6[%c10, %c0_35], %171 {strides = array<i32>} : memref<16x64xf32, #tpu.memory_space<vmem>>, vector<2x64xf32>,
    %173 = vector.extract_strided_slice %5 {offsets = [12, 0], sizes = [2, 256], strides = [1, 1]} : vector<16x256xf32> to vector<2x256xf32>
    %cst_36 = arith.constant dense<0.000000e+00> : vector<2x256xf32>
    %174 = tpu.matmul %171, %0, %cst_36 {dimension_numbers = #tpu.dot_dimension_numbers<[1], [0], [0], [1], [0, 0, 1, 1], [], []>} : vector<2x64xf32>, vector<64x256xf32>, vector<2x256xf32> -> vector<2x256xf32>
    %175 = arith.addf %173, %174 : vector<2x256xf32>
    %176 = vector.extract_strided_slice %175 {offsets = [0, 0], sizes = [2, 64], strides = [1, 1]} : vector<2x256xf32> to vector<2x64xf32>
    %177 = arith.negf %176 : vector<2x64xf32>
    %178 = math.exp %177 : vector<2x64xf32>
    %cst_37 = arith.constant 1.000000e+00 : f32
    %179 = vector.broadcast %cst_37 : f32 to vector<2x64xf32>
    %180 = arith.addf %179, %178 : vector<2x64xf32>
    %181 = arith.divf %179, %180 : vector<2x64xf32>
    %182 = vector.extract_strided_slice %175 {offsets = [0, 64], sizes = [2, 64], strides = [1, 1]} : vector<2x256xf32> to vector<2x64xf32>
    %183 = arith.negf %182 : vector<2x64xf32>
    %184 = math.exp %183 : vector<2x64xf32>
    %cst_38 = arith.constant 1.000000e+00 : f32
    %185 = vector.broadcast %cst_38 : f32 to vector<2x64xf32>
    %186 = arith.addf %185, %184 : vector<2x64xf32>
    %187 = arith.divf %185, %186 : vector<2x64xf32>
    %188 = vector.extract_strided_slice %175 {offsets = [0, 128], sizes = [2, 64], strides = [1, 1]} : vector<2x256xf32> to vector<2x64xf32>
    %189 = vector.extract_strided_slice %175 {offsets = [0, 192], sizes = [2, 64], strides = [1, 1]} : vector<2x256xf32> to vector<2x64xf32>
    %190 = arith.negf %189 : vector<2x64xf32>
    %191 = math.exp %190 : vector<2x64xf32>
    %cst_39 = arith.constant 1.000000e+00 : f32
    %192 = vector.broadcast %cst_39 : f32 to vector<2x64xf32>
    %193 = arith.addf %192, %191 : vector<2x64xf32>
    %194 = arith.divf %192, %193 : vector<2x64xf32>
    %195 = arith.mulf %187, %169 : vector<2x64xf32>
    %196 = arith.mulf %181, %188 : vector<2x64xf32>
    %197 = arith.addf %195, %196 : vector<2x64xf32>
    %198 = math.tanh %197 : vector<2x64xf32>
    %199 = arith.mulf %194, %198 : vector<2x64xf32>
    %c12 = arith.constant 12 : index
    %c0_40 = arith.constant 0 : index
    %200 = vector.load %arg6[%c12, %c0_40] : memref<16x64xf32, #tpu.memory_space<vmem>>, vector<2x64xf32>
    tpu.vector_store %arg6[%c12, %c0_40], %199 {strides = array<i32>} : memref<16x64xf32, #tpu.memory_space<vmem>>, vector<2x64xf32>,
    %201 = vector.extract_strided_slice %5 {offsets = [14, 0], sizes = [2, 256], strides = [1, 1]} : vector<16x256xf32> to vector<2x256xf32>
    %cst_41 = arith.constant dense<0.000000e+00> : vector<2x256xf32>
    %202 = tpu.matmul %199, %0, %cst_41 {dimension_numbers = #tpu.dot_dimension_numbers<[1], [0], [0], [1], [0, 0, 1, 1], [], []>} : vector<2x64xf32>, vector<64x256xf32>, vector<2x256xf32> -> vector<2x256xf32>
    %203 = arith.addf %201, %202 : vector<2x256xf32>
    %204 = vector.extract_strided_slice %203 {offsets = [0, 0], sizes = [2, 64], strides = [1, 1]} : vector<2x256xf32> to vector<2x64xf32>
    %205 = arith.negf %204 : vector<2x64xf32>
    %206 = math.exp %205 : vector<2x64xf32>
    %cst_42 = arith.constant 1.000000e+00 : f32
    %207 = vector.broadcast %cst_42 : f32 to vector<2x64xf32>
    %208 = arith.addf %207, %206 : vector<2x64xf32>
    %209 = arith.divf %207, %208 : vector<2x64xf32>
    %210 = vector.extract_strided_slice %203 {offsets = [0, 64], sizes = [2, 64], strides = [1, 1]} : vector<2x256xf32> to vector<2x64xf32>
    %211 = arith.negf %210 : vector<2x64xf32>
    %212 = math.exp %211 : vector<2x64xf32>
    %cst_43 = arith.constant 1.000000e+00 : f32
    %213 = vector.broadcast %cst_43 : f32 to vector<2x64xf32>
    %214 = arith.addf %213, %212 : vector<2x64xf32>
    %215 = arith.divf %213, %214 : vector<2x64xf32>
    %216 = vector.extract_strided_slice %203 {offsets = [0, 128], sizes = [2, 64], strides = [1, 1]} : vector<2x256xf32> to vector<2x64xf32>
    %217 = vector.extract_strided_slice %203 {offsets = [0, 192], sizes = [2, 64], strides = [1, 1]} : vector<2x256xf32> to vector<2x64xf32>
    %218 = arith.negf %217 : vector<2x64xf32>
    %219 = math.exp %218 : vector<2x64xf32>
    %cst_44 = arith.constant 1.000000e+00 : f32
    %220 = vector.broadcast %cst_44 : f32 to vector<2x64xf32>
    %221 = arith.addf %220, %219 : vector<2x64xf32>
    %222 = arith.divf %220, %221 : vector<2x64xf32>
    %223 = arith.mulf %215, %197 : vector<2x64xf32>
    %224 = arith.mulf %209, %216 : vector<2x64xf32>
    %225 = arith.addf %223, %224 : vector<2x64xf32>
    %226 = math.tanh %225 : vector<2x64xf32>
    %227 = arith.mulf %222, %226 : vector<2x64xf32>
    %c14 = arith.constant 14 : index
    %c0_45 = arith.constant 0 : index
    %228 = vector.load %arg6[%c14, %c0_45] : memref<16x64xf32, #tpu.memory_space<vmem>>, vector<2x64xf32>
    tpu.vector_store %arg6[%c14, %c0_45], %227 {strides = array<i32>} : memref<16x64xf32, #tpu.memory_space<vmem>>, vector<2x64xf32>,
    %c0_46 = arith.constant 0 : index
    %c0_47 = arith.constant 0 : index
    %229 = vector.load %arg6[%c0_46, %c0_47] : memref<16x64xf32, #tpu.memory_space<vmem>>, vector<16x64xf32>
    %c0_48 = arith.constant 0 : index
    %c0_49 = arith.constant 0 : index
    %230 = vector.load %arg3[%c0_48, %c0_49] : memref<64x128xf32, #tpu.memory_space<vmem>>, vector<64x128xf32>
    %cst_50 = arith.constant dense<0.000000e+00> : vector<16x128xf32>
    %231 = tpu.matmul %229, %230, %cst_50 {dimension_numbers = #tpu.dot_dimension_numbers<[1], [0], [0], [1], [0, 0, 1, 1], [], []>} : vector<16x64xf32>, vector<64x128xf32>, vector<16x128xf32> -> vector<16x128xf32>
    %c0_51 = arith.constant 0 : index
    %c0_52 = arith.constant 0 : index
    %232 = vector.load %arg4[%c0_51, %c0_52] : memref<1x128xf32, #tpu.memory_space<vmem>>, vector<1x128xf32>
    %233 = vector.broadcast %232 : vector<1x128xf32> to vector<16x128xf32>
    %234 = arith.addf %231, %233 : vector<16x128xf32>
    %c0_53 = arith.constant 0 : index
    %c0_54 = arith.constant 0 : index
    %235 = vector.load %arg5[%c0_53, %c0_54] : memref<16x128xf32, #tpu.memory_space<vmem>>, vector<16x128xf32>
    tpu.vector_store %arg5[%c0_53, %c0_54], %234 {strides = array<i32>} : memref<16x128xf32, #tpu.memory_space<vmem>>, vector<16x128xf32>,
    return
  }
}

</mosaic_0001>

<bundles_post_ra>
// kernel: tpu_custom_call.1
= control target key start
LH: loop header
LB: loop body
LE: loop exit
PB: predicated region body
PF: predicated region fallthrough
CT: control target
= control target key end

     0   :  { %10 = vsyncpa [#allocation4], 0  ;;  %s1775_s0 = inlined_call_operand.hbm [shape: f32[16,64], index: 0, kind: input, shape index: {}]   ;;  %s1776_s1 = inlined_call_operand.hbm [shape: f32[64,256], index: 1, kind: input, shape index: {}]   ;;  %s1777_s2 = inlined_call_operand.vmem [shape: f32[1,256], index: 2, kind: input, shape index: {}]   ;;  %s1778_s3 = inlined_call_operand.hbm [shape: f32[64,128], index: 3, kind: input, shape index: {}]   ;;  %s1779_s4 = inlined_call_operand.vmem [shape: f32[1,128], index: 4, kind: input, shape index: {}]   ;;  %s1780_s5 = inlined_call_operand.hbm [shape: f32[16,128], index: 5, kind: output, shape index: {}]  }
   0x1   :  { %11 = vsyncpa [#allocation7], 0 }
   0x2   :  { %12 = vsyncpa [#allocation5], 0  ;;  %s1488_s18 = smov [#allocation6]   ;;  %s1394_s22 = scalar_lea.hbm %s1776_s1, 2048 }
   0x3   :  { %s30_s19 = sshll.u32 %s1488_s18, 4  ;;  %p1395_p0 = scmp.ne.s32.totalorder %s1776_s1, %s1394_s22  ;;  %s31_s19 = int_to_ptr.vmem [resolvable:$true] %s30_s19 }
   0x4   :  { %p1398_p1 = scmp.lt.u32.totalorder %s1394_s22, %s1776_s1 }
   0x6   :  { %p1400_p2 = pnand %p1398_p1, %p1395_p0 }
   0x8   :  { %1403 = shalt.err (!%p1400_p2)
}
   0x9   :  { %s1404_s27 = scalar_lea.vmem %s31_s19, 2048  ;;  %p1409_p4 = scmp.lt.s32.totalorder %s31_s19, %s31_s19 }
   0xa   :  { %p1405_p3 = scmp.ne.s32.totalorder %s31_s19, %s1404_s27  ;;  %p1410_p5 = scmp.lt.s32.totalorder %s1404_s27, %s1404_s27 }
   0xc   :  { %p1411_p6 = por %p1410_p5, %p1409_p4 }
   0xe   :  { %p1412_p7 = pnand %p1411_p6, %p1405_p3 }
  0x10   :  { %1415 = shalt.err (!%p1412_p7)
}
  0x11   :  { %s1489_s28 = smov 256   ;;  %s1490_s29 = smov 16  }
  0x12   :  { %36 = dma.hbm_to_vmem [thread:$0]  %s1776_s1, 2048, %s31_s19, [#allocation7], %s1489_s28, %s1489_s28, %s1490_s29  }
  0x13   :  { %s1491_s7 = smov [#allocation3]   ;;  %s1416_s11 = scalar_lea.hbm %s1775_s0, 256 }
  0x14   :  { %s18_s8 = sshll.u32 %s1491_s7, 4  ;;  %p1417_p8 = scmp.ne.s32.totalorder %s1775_s0, %s1416_s11  ;;  %s19_s8 = int_to_ptr.vmem [resolvable:$true] %s18_s8 }
  0x15   :  { %p1420_p9 = scmp.lt.u32.totalorder %s1416_s11, %s1775_s0 }
  0x17   :  { %p1422_p10 = pnand %p1420_p9, %p1417_p8 }
  0x19   :  { %1425 = shalt.err (!%p1422_p10)
}
  0x1a   :  { %s1426_s16 = scalar_lea.vmem %s19_s8, 256  ;;  %p1431_p12 = scmp.lt.s32.totalorder %s19_s8, %s19_s8 }
  0x1b   :  { %p1427_p11 = scmp.ne.s32.totalorder %s19_s8, %s1426_s16  ;;  %p1432_p13 = scmp.lt.s32.totalorder %s1426_s16, %s1426_s16 }
  0x1d   :  { %p1433_p0 = por %p1432_p13, %p1431_p12 }
  0x1f   :  { %p1434_p1 = pnand %p1433_p0, %p1427_p11 }
  0x21   :  { %1437 = shalt.err (!%p1434_p1)
}
  0x22   :  { %s1492_s1 = smov 128   ;;  %s1493_s17 = smov 8  }
  0x23   :  { %24 = dma.hbm_to_vmem [thread:$0]  %s1775_s0, 256, %s19_s8, [#allocation4], %s1492_s1, %s1492_s1, %s1493_s17  }
  0x24   :  { %s1494_s20 = smov [#allocation8]   ;;  %s1438_s24 = scalar_lea.hbm %s1778_s3, 1024 }
  0x25   :  { %s44_s21 = sshll.u32 %s1494_s20, 4  ;;  %p1439_p2 = scmp.ne.s32.totalorder %s1778_s3, %s1438_s24  ;;  %s45_s21 = int_to_ptr.vmem [resolvable:$true] %s44_s21 }
  0x26   :  { %p1442_p3 = scmp.lt.u32.totalorder %s1438_s24, %s1778_s3 }
  0x28   :  { %p1444_p4 = pnand %p1442_p3, %p1439_p2 }
  0x2a   :  { %1447 = shalt.err (!%p1444_p4)
}
  0x2b   :  { %s1448_s29 = scalar_lea.vmem %s45_s21, 1024  ;;  %p1453_p6 = scmp.lt.s32.totalorder %s45_s21, %s45_s21 }
  0x2c   :  { %p1449_p5 = scmp.ne.s32.totalorder %s45_s21, %s1448_s29  ;;  %p1454_p7 = scmp.lt.s32.totalorder %s1448_s29, %s1448_s29 }
  0x2e   :  { %p1455_p8 = por %p1454_p7, %p1453_p6 }
  0x30   :  { %p1456_p9 = pnand %p1455_p8, %p1449_p5 }
  0x32   :  { %1459 = shalt.err (!%p1456_p9)
}
  0x33   :  { %50 = dma.hbm_to_vmem [thread:$0]  %s1778_s3, 1024, %s45_s21, [#allocation7], %s1492_s1, %s1492_s1, %s1493_s17  }
  0x34   :  { %1482 = dma.done.wait [#allocation4], 256  }
  0x35   :  { %1483 = vsyncadd [#allocation4], 4294967040 }
  0x36   :  { %1484 = dma.done.wait [#allocation7], 3072  }
  0x37   :  { %1485 = vsyncadd [#allocation7], 4294964224  ;;  %v1495_v0 = vmov 0.0   ;;  %v63_v1 = vld [vmem:[#allocation6 + $0x8] sm:$0xff]  ;;  %v65_v2 = vld [vmem:[#allocation6 + $0x18] sm:$0xff]  ;;  %vm92_vm0 = vcmask 523264   ;;  %v82_v26 = vlaneseq }
  0x38   :  { %163 = vmatprep.mubr.f32.mxu0 %v1495_v0  ;;  %269 = vmatprep.mubr.f32.mxu1 %v1495_v0  ;;  %v62_v3 = vld [vmem:[#allocation6] sm:$0xff]  ;;  %v1572_v4 = vpack.c.bf16 %v65_v2, %v63_v1  ;;  %v64_v5 = vld [vmem:[#allocation6 + $0x10] sm:$0xff]  ;;  %v67_v6 = vld [vmem:[#allocation6 + $0x28] sm:$0xff]  ;;  %vm201_vm1 = vcmask 517120   ;;  %vm312_vm2 = vcmask 519170   ;;  %vm540_vm3 = vcmask 523270  }
  0x39   :  { %v69_v7 = vld [vmem:[#allocation6 + $0x38] sm:$0xff]  ;;  %v1574_v8 = vpack.c.bf16 %v64_v5, %v62_v3  ;;  %v66_v10 = vld [vmem:[#allocation6 + $0x20] sm:$0xff]  ;;  %v68_v11 = vld [vmem:[#allocation6 + $0x30] sm:$0xff]  ;;  %v83_v27 = vshrl.u32 %v82_v26, 7  ;;  %vm426_vm4 = vcmask 521220   ;;  %s1497_s9 = smov [#allocation9]  }
  0x3a   :  { %v1576_v9 = vpack.c.bf16 %v69_v7, %v67_v6  ;;  %v71_v12 = vld [vmem:[#allocation6 + $0x48] sm:$0xff]  ;;  %1161 = vmatprep.subr.bf16.mxu0 %v1572_v4  ;;  %v73_v13 = vld [vmem:[#allocation6 + $0x58] sm:$0xff]  ;;  %1177 = vmatprep.subr.bf16.mxu1 %v1572_v4  ;;  %v1581_v14 = vpack.c.bf16 %v68_v11, %v66_v10  ;;  %v70_v16 = vld [vmem:[#allocation6 + $0x40] sm:$0xff]  ;;  %s1090_s10 = sshll.u32 %s1497_s9, 4  ;;  %s1091_s10 = int_to_ptr.vmem [resolvable:$true] %s1090_s10 }
  0x3b   :  { %1163 = vmatpush1.bf16.msra.mxu0 %v1574_v8  ;;  %1179 = vmatpush1.bf16.msra.mxu1 %v1574_v8  ;;  %v1585_v15 = vpack.c.bf16 %v73_v13, %v71_v12  ;;  %v72_v17 = vld [vmem:[#allocation6 + $0x50] sm:$0xff]  ;;  %v75_v18 = vld [vmem:[#allocation6 + $0x68] sm:$0xff]  ;;  %v77_v19 = vld [vmem:[#allocation6 + $0x78] sm:$0xff]  ;;  %v84_v28 = vsub.s32 0, %v83_v27  ;;  %v88_v37 = vsub.s32 1, %v83_v27  ;;  %s1460_s11 = scalar_lea.vmem %s1091_s10, 256  ;;  %p1465_p11 = scmp.lt.s32.totalorder %s1091_s10, %s1091_s10 }
  0x3c   :  { %1165 = vmatprep.subr.bf16.mxu0 %v1576_v9  ;;  %1181 = vmatprep.subr.bf16.mxu1 %v1576_v9  ;;  %v1589_v20 = vpack.c.bf16 %v72_v17, %v70_v16  ;;  %v1593_v21 = vpack.c.bf16 %v77_v19, %v75_v18  ;;  %v74_v22 = vld [vmem:[#allocation6 + $0x60] sm:$0xff]  ;;  %v76_v23 = vld [vmem:[#allocation6 + $0x70] sm:$0xff]  ;;  %v80_v2 = vld [vmem:[#allocation3 + $0x8] sm:$0xff]  ;;  %p1461_p10 = scmp.ne.s32.totalorder %s1091_s10, %s1460_s11  ;;  %p1466_p12 = scmp.lt.s32.totalorder %s1460_s11, %s1460_s11 }
  0x3d   :  { %v1597_v24 = vpack.c.bf16 %v76_v23, %v74_v22  ;;  %v79_v25 = vld [vmem:[#allocation3] sm:$0xff]  ;;  %v78_v29 = vld [vmem:[%s1777_s2] sm:$0x3]  ;;  %s1496_s2 = smov 64  }
  0x3e   :  { %v1619_v30 = vrot.slane %v78_v29, %v84_v28  ;;  %v1625_v38 = vrot.slane %v78_v29, %v88_v37  ;;  %p1467_p13 = por %p1466_p12, %p1465_p11 }
  0x3f   :  { %1167 = vmatpush1.bf16.msra.mxu0 %v1581_v14  ;;  %1183 = vmatpush1.bf16.msra.mxu1 %v1581_v14 }
  0x40   :  { %1169 = vmatprep.subr.bf16.mxu0 %v1585_v15  ;;  %1185 = vmatprep.subr.bf16.mxu1 %v1585_v15  ;;  %p1468_p0 = pnand %p1467_p13, %p1461_p10 }
  0x43   :  { %1171 = vmatpush1.bf16.msra.mxu0 %v1589_v20  ;;  %1187 = vmatpush1.bf16.msra.mxu1 %v1589_v20 }
  0x44   :  { %1173 = vmatprep.subr.bf16.mxu0 %v1593_v21  ;;  %1189 = vmatprep.subr.bf16.mxu1 %v1593_v21 }
  0x47   :  { %1175 = vmatpush1.bf16.msra.mxu0 %v1597_v24  ;;  %1191 = vmatpush1.bf16.msra.mxu1 %v1597_v24 }
  0x48   :  { %1193 = vmatprep.subr.bf16.mxu0 %v1572_v4  ;;  %1209 = vmatprep.subr.bf16.mxu1 %v1572_v4 }
  0x4a   :  { %1103 = vmatmul.mubr.msk.f32.vlgmr.msra.gmra.mrb[0].mxu0 %vm92_vm0, %v79_v25 }
  0x4b   :  { %1195 = vmatpush1.bf16.msra.mxu0 %v1574_v8  ;;  %169 = vmatprep.mubr.f32.mxu0 %v1495_v0 }
  0x4c   :  { %1197 = vmatprep.subr.bf16.mxu0 %v1576_v9 }
  0x4e   :  { %1104 = vmatmul.mubr.msk.f32.gmra.mrb[2].mxu0 %vm92_vm0, %v80_v2 }
  0x4f   :  { %1199 = vmatpush1.bf16.msra.mxu0 %v1581_v14  ;;  %383 = vmatprep.mubr.f32.mxu0 %v1495_v0 }
  0x50   :  { %1201 = vmatprep.subr.bf16.mxu0 %v1585_v15 }
  0x53   :  { %1203 = vmatpush1.bf16.msra.mxu0 %v1589_v20 }
  0x54   :  { %1205 = vmatprep.subr.bf16.mxu0 %v1593_v21 }
  0x57   :  { %1207 = vmatpush1.bf16.msra.mxu0 %v1597_v24 }
  0x58   :  { %1225 = vmatprep.subr.bf16.mxu0 %v1572_v4 }
 0x11d   :  { %v165_v31 = vpop.f32.mrb[0].mxu0 }
 0x11e   :  { %v1622_v32 = vadd.f32 %v165_v31, %v1619_v30  ;;  %v167_v33 = vpop.f32.mrb[1].mxu0 }
 0x11f   :  { %v1628_v39 = vadd.f32 %v167_v33, %v1625_v38 }
 0x120   :  { %v1105_v34 = vmul.f32 -1.442695, %v1622_v32 }
 0x121   :  { %v1106_v42 = vmul.f32 -1.442695, %v1628_v39  ;;  %v1654_v17 = vpop.f32.mrb[2].mxu0 }
 0x122   :  { %1314 = vpow2.f32 %v1105_v34  ;;  %v1656_v18 = vpop.f32.mrb[3].mxu0 }
 0x12c   :  { %v1315_v35 = vpop.eup %1314 }
 0x12d   :  { %v179_v36 = vadd.f32 1.0, %v1315_v35 }
 0x12f   :  { %1316 = vrcp.f32 %v179_v36 }
 0x130   :  { %1318 = vpow2.f32 %v1106_v42 }
 0x139   :  { %v1317_v40 = vpop.eup %1316 }
 0x13a   :  { %v189_v41 = vmul.f32 %v1317_v40, %v1628_v39  ;;  %v1319_v43 = vpop.eup %1318  ;;  %v188_v45 = vmul.f32 0.0, %v1317_v40 }
 0x13b   :  { %v185_v44 = vadd.f32 1.0, %v1319_v43 }
 0x13c   :  { %191 = vrot.lane.b32.xlu0 %v189_v41, %s1496_s2 }
 0x13d   :  { %1320 = vrcp.f32 %v185_v44 }
 0x147   :  { %v1321_v48 = vpop.eup %1320 }
 0x1ae   :  { %v192_v46 = vpop.permute.xlu0 %191 }
 0x1af   :  { %v194_v47 = vadd.f32 %v192_v46, %v188_v45 }
 0x1b1   :  { %1322 = vtanh.f32 %v194_v47  ;;  %v297_v60 = vrot.slane %v194_v47, 6 }
 0x1bb   :  { %v1323_v49 = vpop.eup %1322 }
 0x1bc   :  { %v196_v50 = vmul.f32 %v1323_v49, %v1321_v48 }
 0x1be   :  { %198 = vrot.lane.b32.xlu0 %v196_v50, %s1496_s2 }
 0x230   :  { %v199_v51 = vpop.permute.xlu0 %198 }
 0x231   :  { %202 = vst.msk [vmem:[#allocation2] sm:$0x3] %vm201_vm1, %v199_v51  ;;  %1107 = vmatmul.mubr.msk.f32.vlgmr.msra.gmra.mrb[0].mxu1 %vm92_vm0, %v199_v51 }
 0x232   :  { %1211 = vmatpush1.bf16.msra.mxu1 %v1574_v8  ;;  %497 = vmatprep.mubr.f32.mxu1 %v1495_v0 }
 0x233   :  { %1213 = vmatprep.subr.bf16.mxu1 %v1576_v9 }
 0x236   :  { %1215 = vmatpush1.bf16.msra.mxu1 %v1581_v14 }
 0x237   :  { %1217 = vmatprep.subr.bf16.mxu1 %v1585_v15 }
 0x23a   :  { %1219 = vmatpush1.bf16.msra.mxu1 %v1589_v20 }
 0x23b   :  { %1221 = vmatprep.subr.bf16.mxu1 %v1593_v21 }
 0x23e   :  { %1223 = vmatpush1.bf16.msra.mxu1 %v1597_v24 }
 0x23f   :  { %1241 = vmatprep.subr.bf16.mxu1 %v1572_v4 }
 0x304   :  { %v271_v52 = vpop.f32.mrb[0].mxu1 }
 0x305   :  { %v278_v53 = vrot.slane %v271_v52, 6  ;;  %v273_v54 = vpop.f32.mrb[1].mxu1 }
 0x306   :  { %v279_v59 = vrot.slane %v273_v54, 6 }
 0x307   :  { %v282_v55 = vadd.f32 %v278_v53, %v1622_v32 }
 0x308   :  { %v283_v61 = vadd.f32 %v279_v59, %v1628_v39 }
 0x309   :  { %v1108_v56 = vmul.f32 -1.442695, %v282_v55 }
 0x30a   :  { %v1109_v3 = vmul.f32 -1.442695, %v283_v61 }
 0x30b   :  { %1324 = vpow2.f32 %v1108_v56 }
 0x315   :  { %v1325_v57 = vpop.eup %1324 }
 0x316   :  { %v287_v58 = vadd.f32 1.0, %v1325_v57 }
 0x318   :  { %1326 = vrcp.f32 %v287_v58 }
 0x319   :  { %1328 = vpow2.f32 %v1109_v3 }
 0x322   :  { %v1327_v62 = vpop.eup %1326 }
 0x323   :  { %v300_v63 = vmul.f32 %v1327_v62, %v283_v61  ;;  %v299_v1 = vmul.f32 %v1327_v62, %v297_v60  ;;  %v1329_v5 = vpop.eup %1328 }
 0x324   :  { %v293_v6 = vadd.f32 1.0, %v1329_v5 }
 0x325   :  { %302 = vrot.lane.b32.xlu1 %v300_v63, %s1496_s2 }
 0x326   :  { %1330 = vrcp.f32 %v293_v6 }
 0x330   :  { %v1331_v11 = vpop.eup %1330 }
 0x397   :  { %v303_v7 = vpop.permute.xlu1 %302 }
 0x398   :  { %v305_v10 = vadd.f32 %v303_v7, %v299_v1 }
 0x39a   :  { %1332 = vtanh.f32 %v305_v10  ;;  %v411_v33 = vrot.slane %v305_v10, 6  ;;  %v1703_v10 = vadd.f32 %v1654_v17, %v1619_v30 }
 0x3a4   :  { %v1333_v12 = vpop.eup %1332 }
 0x3a5   :  { %v1650_v13 = vmul.f32 %v1333_v12, %v1331_v11 }
 0x3a7   :  { %v314_v16 = vrot.slane %v1650_v13, 2 }
 0x3a9   :  { %315 = vrot.lane.b32.xlu1 %v314_v16, %s1496_s2 }
 0x41b   :  { %v316_v19 = vpop.permute.xlu1 %315 }
 0x41c   :  { %1110 = vmatmul.mubr.msk.f32.vlgmr.msra.gmra.mrb[4].mxu0 %vm92_vm0, %v316_v19 }
 0x41d   :  { %1227 = vmatpush1.bf16.msra.mxu0 %v1574_v8  ;;  %611 = vmatprep.mubr.f32.mxu0 %v1495_v0 }
 0x41e   :  { %1229 = vmatprep.subr.bf16.mxu0 %v1576_v9 }
 0x421   :  { %1231 = vmatpush1.bf16.msra.mxu0 %v1581_v14 }
 0x422   :  { %1233 = vmatprep.subr.bf16.mxu0 %v1585_v15 }
 0x425   :  { %1235 = vmatpush1.bf16.msra.mxu0 %v1589_v20 }
 0x426   :  { %1237 = vmatprep.subr.bf16.mxu0 %v1593_v21 }
 0x429   :  { %1239 = vmatpush1.bf16.msra.mxu0 %v1597_v24 }
 0x42a   :  { %1257 = vmatprep.subr.bf16.mxu0 %v1572_v4 }
 0x4ef   :  { %v385_v22 = vpop.f32.mrb[4].mxu0 }
 0x4f0   :  { %v392_v23 = vrot.slane %v385_v22, 4  ;;  %v387_v25 = vpop.f32.mrb[5].mxu0 }
 0x4f1   :  { %v393_v31 = vrot.slane %v387_v25, 4  ;;  %v1708_v25 = vadd.f32 %v1656_v18, %v1625_v38 }
 0x4f2   :  { %v396_v26 = vadd.f32 %v392_v23, %v1622_v32 }
 0x4f3   :  { %v397_v34 = vadd.f32 %v393_v31, %v1628_v39 }
 0x4f4   :  { %v1111_v27 = vmul.f32 -1.442695, %v396_v26 }
 0x4f5   :  { %v1112_v40 = vmul.f32 -1.442695, %v397_v34 }
 0x4f6   :  { %1334 = vpow2.f32 %v1111_v27 }
 0x500   :  { %v1335_v28 = vpop.eup %1334 }
 0x501   :  { %v401_v29 = vadd.f32 1.0, %v1335_v28 }
 0x503   :  { %1336 = vrcp.f32 %v401_v29 }
 0x504   :  { %1338 = vpow2.f32 %v1112_v40 }
 0x50d   :  { %v1337_v35 = vpop.eup %1336 }
 0x50e   :  { %v414_v36 = vmul.f32 %v1337_v35, %v397_v34  ;;  %v413_v37 = vmul.f32 %v1337_v35, %v411_v33  ;;  %v1339_v41 = vpop.eup %1338 }
 0x50f   :  { %v407_v42 = vadd.f32 1.0, %v1339_v41 }
 0x510   :  { %416 = vrot.lane.b32.xlu0 %v414_v36, %s1496_s2 }
 0x511   :  { %1340 = vrcp.f32 %v407_v42 }
 0x51b   :  { %v1341_v45 = vpop.eup %1340 }
 0x582   :  { %v417_v43 = vpop.permute.xlu0 %416 }
 0x583   :  { %v419_v44 = vadd.f32 %v417_v43, %v413_v37 }
 0x585   :  { %1342 = vtanh.f32 %v419_v44  ;;  %v525_v58 = vrot.slane %v419_v44, 6 }
 0x58f   :  { %v1343_v46 = vpop.eup %1342 }
 0x590   :  { %v1671_v47 = vmul.f32 %v1343_v46, %v1341_v45 }
 0x592   :  { %v428_v48 = vrot.slane %v1671_v47, 4 }
 0x594   :  { %429 = vrot.lane.b32.xlu1 %v428_v48, %s1496_s2 }
 0x606   :  { %v430_v49 = vpop.permute.xlu1 %429 }
 0x607   :  { %1113 = vmatmul.mubr.msk.f32.vlgmr.msra.gmra.mrb[2].mxu1 %vm92_vm0, %v430_v49 }
 0x608   :  { %1243 = vmatpush1.bf16.msra.mxu1 %v1574_v8  ;;  %715 = vmatprep.mubr.f32.mxu1 %v1495_v0 }
 0x609   :  { %1245 = vmatprep.subr.bf16.mxu1 %v1576_v9 }
 0x60c   :  { %1247 = vmatpush1.bf16.msra.mxu1 %v1581_v14 }
 0x60d   :  { %1249 = vmatprep.subr.bf16.mxu1 %v1585_v15 }
 0x610   :  { %1251 = vmatpush1.bf16.msra.mxu1 %v1589_v20 }
 0x611   :  { %1253 = vmatprep.subr.bf16.mxu1 %v1593_v21 }
 0x614   :  { %1255 = vmatpush1.bf16.msra.mxu1 %v1597_v24 }
 0x615   :  { %1273 = vmatprep.subr.bf16.mxu1 %v1572_v4 }
 0x6da   :  { %v499_v50 = vpop.f32.mrb[2].mxu1 }
 0x6db   :  { %v506_v51 = vrot.slane %v499_v50, 2  ;;  %v501_v52 = vpop.f32.mrb[3].mxu1 }
 0x6dc   :  { %v507_v57 = vrot.slane %v501_v52, 2 }
 0x6dd   :  { %v510_v53 = vadd.f32 %v506_v51, %v1622_v32 }
 0x6de   :  { %v511_v59 = vadd.f32 %v507_v57, %v1628_v39 }
 0x6df   :  { %v1114_v54 = vmul.f32 -1.442695, %v510_v53 }
 0x6e0   :  { %v1115_v4 = vmul.f32 -1.442695, %v511_v59 }
 0x6e1   :  { %1344 = vpow2.f32 %v1114_v54 }
 0x6eb   :  { %v1345_v55 = vpop.eup %1344 }
 0x6ec   :  { %v515_v56 = vadd.f32 1.0, %v1345_v55 }
 0x6ee   :  { %1346 = vrcp.f32 %v515_v56 }
 0x6ef   :  { %1348 = vpow2.f32 %v1115_v4 }
 0x6f8   :  { %v1347_v60 = vpop.eup %1346 }
 0x6f9   :  { %v528_v61 = vmul.f32 %v1347_v60, %v511_v59  ;;  %v527_v62 = vmul.f32 %v1347_v60, %v525_v58  ;;  %v1349_v63 = vpop.eup %1348 }
 0x6fa   :  { %v521_v1 = vadd.f32 1.0, %v1349_v63 }
 0x6fb   :  { %530 = vrot.lane.b32.xlu0 %v528_v61, %s1496_s2 }
 0x6fc   :  { %1350 = vrcp.f32 %v521_v1 }
 0x706   :  { %v1351_v3 = vpop.eup %1350 }
 0x76d   :  { %v531_v2 = vpop.permute.xlu0 %530 }
 0x76e   :  { %v533_v32 = vadd.f32 %v531_v2, %v527_v62 }
 0x770   :  { %1352 = vtanh.f32 %v533_v32  ;;  %v633_v26 = vrot.slane %v533_v32, 6 }
 0x77a   :  { %v1353_v5 = vpop.eup %1352 }
 0x77b   :  { %v1688_v6 = vmul.f32 %v1353_v5, %v1351_v3 }
 0x77d   :  { %v542_v7 = vrot.slane %v1688_v6, 6 }
 0x77f   :  { %543 = vrot.lane.b32.xlu1 %v542_v7, %s1496_s2 }
 0x7f1   :  { %v544_v39 = vpop.permute.xlu1 %543 }
 0x7f2   :  { %1116 = vmatmul.mubr.msk.f32.vlgmr.msra.gmra.mrb[6].mxu0 %vm92_vm0, %v544_v39 }
 0x7f3   :  { %1259 = vmatpush1.bf16.msra.mxu0 %v1574_v8  ;;  %828 = vmatprep.mubr.f32.mxu0 %v1495_v0 }
 0x7f4   :  { %1261 = vmatprep.subr.bf16.mxu0 %v1576_v9 }
 0x7f7   :  { %1263 = vmatpush1.bf16.msra.mxu0 %v1581_v14 }
 0x7f8   :  { %1265 = vmatprep.subr.bf16.mxu0 %v1585_v15 }
 0x7fb   :  { %1267 = vmatpush1.bf16.msra.mxu0 %v1589_v20 }
 0x7fc   :  { %1269 = vmatprep.subr.bf16.mxu0 %v1593_v21 }
 0x7ff   :  { %1271 = vmatpush1.bf16.msra.mxu0 %v1597_v24 }
 0x8c5   :  { %v613_v11 = vpop.f32.mrb[6].mxu0 }
 0x8c6   :  { %v618_v12 = vadd.f32 %v613_v11, %v1703_v10  ;;  %v615_v16 = vpop.f32.mrb[7].mxu0 }
 0x8c7   :  { %v619_v27 = vadd.f32 %v615_v16, %v1708_v25 }
 0x8c8   :  { %v1117_v19 = vmul.f32 -1.442695, %v618_v12 }
 0x8c9   :  { %v1118_v17 = vmul.f32 -1.442695, %v619_v27 }
 0x8ca   :  { %1354 = vpow2.f32 %v1117_v19 }
 0x8d4   :  { %v1355_v22 = vpop.eup %1354 }
 0x8d5   :  { %v623_v23 = vadd.f32 1.0, %v1355_v22 }
 0x8d7   :  { %1356 = vrcp.f32 %v623_v23 }
 0x8d8   :  { %1358 = vpow2.f32 %v1118_v17 }
 0x8e1   :  { %v1357_v28 = vpop.eup %1356 }
 0x8e2   :  { %v636_v29 = vmul.f32 %v1357_v28, %v619_v27  ;;  %v635_v30 = vmul.f32 %v1357_v28, %v633_v26  ;;  %v1359_v31 = vpop.eup %1358 }
 0x8e3   :  { %v629_v33 = vadd.f32 1.0, %v1359_v31 }
 0x8e4   :  { %638 = vrot.lane.b32.xlu0 %v636_v29, %s1496_s2 }
 0x8e5   :  { %1360 = vrcp.f32 %v629_v33 }
 0x8ef   :  { %v1361_v36 = vpop.eup %1360 }
 0x956   :  { %v639_v34 = vpop.permute.xlu0 %638 }
 0x957   :  { %v641_v35 = vadd.f32 %v639_v34, %v635_v30 }
 0x959   :  { %1362 = vtanh.f32 %v641_v35 }
 0x963   :  { %v1363_v37 = vpop.eup %1362 }
 0x964   :  { %v643_v38 = vmul.f32 %v1363_v37, %v1361_v36 }
 0x966   :  { %645 = vrot.lane.b32.xlu1 %v643_v38, %s1496_s2 }
 0x9d8   :  { %v646_v18 = vpop.permute.xlu1 %645 }
 0x9d9   :  { %648 = vst.msk [vmem:[#allocation2 + $0x8] sm:$0x3] %vm201_vm1, %v646_v18  ;;  %1119 = vmatmul.mubr.msk.f32.vlgmr.msra.gmra.mrb[4].mxu1 %vm92_vm0, %v646_v18 }
 0x9da   :  { %1275 = vmatpush1.bf16.msra.mxu1 %v1574_v8  ;;  %941 = vmatprep.mubr.f32.mxu1 %v1495_v0 }
 0x9db   :  { %1277 = vmatprep.subr.bf16.mxu1 %v1576_v9 }
 0x9de   :  { %1279 = vmatpush1.bf16.msra.mxu1 %v1581_v14  ;;  %v743_v14 = vrot.slane %v641_v35, 6 }
 0x9df   :  { %1281 = vmatprep.subr.bf16.mxu1 %v1585_v15 }
 0x9e2   :  { %1283 = vmatpush1.bf16.msra.mxu1 %v1589_v20 }
 0x9e3   :  { %1285 = vmatprep.subr.bf16.mxu1 %v1593_v21 }
 0x9e6   :  { %1287 = vmatpush1.bf16.msra.mxu1 %v1597_v24 }
 0xaac   :  { %v717_v40 = vpop.f32.mrb[4].mxu1 }
 0xaad   :  { %v724_v41 = vrot.slane %v717_v40, 6  ;;  %v719_v42 = vpop.f32.mrb[5].mxu1 }
 0xaae   :  { %v725_v9 = vrot.slane %v719_v42, 6  ;;  %v988_v42 = vld [vmem:[#allocation8 + $0x8] sm:$0xff] }
 0xaaf   :  { %v728_v43 = vadd.f32 %v724_v41, %v1703_v10  ;;  %v987_v41 = vld [vmem:[#allocation8] sm:$0xff] }
 0xab0   :  { %v729_v15 = vadd.f32 %v725_v9, %v1708_v25 }
 0xab1   :  { %v1120_v8 = vmul.f32 -1.442695, %v728_v43  ;;  %v989_v43 = vld [vmem:[#allocation8 + $0x10] sm:$0xff] }
 0xab2   :  { %v1121_v21 = vmul.f32 -1.442695, %v729_v15 }
 0xab3   :  { %1364 = vpow2.f32 %v1120_v8  ;;  %v1288_v8 = vpack.c.bf16 %v988_v42, %v987_v41 }
 0xab5   :  { %1289 = vmatprep.subr.bf16.mxu0 %v1288_v8 }
 0xabd   :  { %v1365_v0 = vpop.eup %1364 }
 0xabe   :  { %v733_v44 = vadd.f32 1.0, %v1365_v0  ;;  %v990_v0 = vld [vmem:[#allocation8 + $0x18] sm:$0xff] }
 0xac0   :  { %1366 = vrcp.f32 %v733_v44 }
 0xac1   :  { %1368 = vpow2.f32 %v1121_v21  ;;  %v994_v21 = vld [vmem:[#allocation8 + $0x38] sm:$0xff] }
 0xaca   :  { %v1367_v45 = vpop.eup %1366 }
 0xacb   :  { %v746_v20 = vmul.f32 %v1367_v45, %v729_v15  ;;  %v745_v46 = vmul.f32 %v1367_v45, %v743_v14  ;;  %v1369_v24 = vpop.eup %1368  ;;  %v991_v15 = vld [vmem:[#allocation8 + $0x20] sm:$0xff]  ;;  %v992_v45 = vld [vmem:[#allocation8 + $0x28] sm:$0xff] }
 0xacc   :  { %v739_v48 = vadd.f32 1.0, %v1369_v24 }
 0xacd   :  { %748 = vrot.lane.b32.xlu0 %v746_v20, %s1496_s2 }
 0xace   :  { %1370 = vrcp.f32 %v739_v48 }
 0xad8   :  { %v1371_v51 = vpop.eup %1370 }
 0xb3f   :  { %v749_v49 = vpop.permute.xlu0 %748 }
 0xb40   :  { %v751_v50 = vadd.f32 %v749_v49, %v745_v46  ;;  %v1296_v46 = vpack.c.bf16 %v992_v45, %v991_v15 }
 0xb42   :  { %1372 = vtanh.f32 %v751_v50  ;;  %v856_v63 = vrot.slane %v751_v50, 6 }
 0xb4c   :  { %v1373_v52 = vpop.eup %1372 }
 0xb4d   :  { %v1726_v53 = vmul.f32 %v1373_v52, %v1371_v51 }
 0xb4f   :  { %v759_v54 = vrot.slane %v1726_v53, 2 }
 0xb51   :  { %760 = vrot.lane.b32.xlu1 %v759_v54, %s1496_s2 }
 0xbc3   :  { %v761_v55 = vpop.permute.xlu1 %760 }
 0xbc4   :  { %1122 = vmatmul.mubr.msk.f32.vlgmr.msra.gmra.mrb[8].mxu0 %vm92_vm0, %v761_v55 }
 0xbc5   :  { %1291 = vmatpush3.bf16.msra.mxu0 %v1288_v8 }
 0xc97   :  { %v830_v56 = vpop.f32.mrb[8].mxu0 }
 0xc98   :  { %v837_v57 = vrot.slane %v830_v56, 4  ;;  %v832_v58 = vpop.f32.mrb[9].mxu0  ;;  %v1128_v56 = vld [vmem:[%s1779_s4] ss:$0 sm:$0xff] }
 0xc99   :  { %v838_v4 = vrot.slane %v832_v58, 4 }
 0xc9a   :  { %v841_v59 = vadd.f32 %v837_v57, %v1703_v10 }
 0xc9b   :  { %v842_v1 = vadd.f32 %v838_v4, %v1708_v25 }
 0xc9c   :  { %v1123_v60 = vmul.f32 -1.442695, %v841_v59 }
 0xc9d   :  { %v1124_v5 = vmul.f32 -1.442695, %v842_v1 }
 0xc9e   :  { %1374 = vpow2.f32 %v1123_v60 }
 0xca8   :  { %v1375_v61 = vpop.eup %1374 }
 0xca9   :  { %v846_v62 = vadd.f32 1.0, %v1375_v61 }
 0xcab   :  { %1376 = vrcp.f32 %v846_v62 }
 0xcac   :  { %1378 = vpow2.f32 %v1124_v5 }
 0xcb5   :  { %v1377_v2 = vpop.eup %1376 }
 0xcb6   :  { %v859_v32 = vmul.f32 %v1377_v2, %v842_v1  ;;  %v858_v3 = vmul.f32 %v1377_v2, %v856_v63  ;;  %v1379_v7 = vpop.eup %1378 }
 0xcb7   :  { %v852_v39 = vadd.f32 1.0, %v1379_v7 }
 0xcb8   :  { %861 = vrot.lane.b32.xlu0 %v859_v32, %s1496_s2 }
 0xcb9   :  { %1380 = vrcp.f32 %v852_v39 }
 0xcc3   :  { %v1381_v16 = vpop.eup %1380 }
 0xd2a   :  { %v862_v11 = vpop.permute.xlu0 %861 }
 0xd2b   :  { %v864_v12 = vadd.f32 %v862_v11, %v858_v3 }
 0xd2d   :  { %1382 = vtanh.f32 %v864_v12  ;;  %v969_v36 = vrot.slane %v864_v12, 6 }
 0xd37   :  { %v1383_v19 = vpop.eup %1382 }
 0xd38   :  { %v866_v22 = vmul.f32 %v1383_v19, %v1381_v16 }
 0xd3a   :  { %v872_v23 = vrot.slane %v866_v22, 4 }
 0xd3c   :  { %873 = vrot.lane.b32.xlu1 %v872_v23, %s1496_s2 }
 0xd40   :  { %309 = vrot.lane.b32.xlu1 %v1650_v13, %s1496_s2 }
 0xd44   :  { %537 = vrot.lane.b32.xlu1 %v1688_v6, %s1496_s2 }
 0xd48   :  { %868 = vrot.lane.b32.xlu1 %v866_v22, %s1496_s2 }
 0xdae   :  { %v874_v26 = vpop.permute.xlu1 %873 }
 0xdaf   :  { %1125 = vmatmul.mubr.msk.f32.vlgmr.msra.gmra.mrb[6].mxu1 %vm92_vm0, %v874_v26 }
 0xdb2   :  { %v310_v27 = vpop.permute.xlu1 %309 }
 0xdb3   :  { %313 = vst.msk [vmem:[#allocation2] sm:$0xc] %vm312_vm2, %v310_v27 }
 0xdb6   :  { %v538_v28 = vpop.permute.xlu1 %537 }
 0xdb7   :  { %541 = vst.msk [vmem:[#allocation2] sm:$0xc0] %vm540_vm3, %v538_v28 }
 0xdba   :  { %v869_v29 = vpop.permute.xlu1 %868 }
 0xdbb   :  { %871 = vst.msk [vmem:[#allocation2 + $0x8] sm:$0x30] %vm426_vm4, %v869_v29 }
 0xe82   :  { %v943_v13 = vpop.f32.mrb[6].mxu1 }
 0xe83   :  { %v950_v30 = vrot.slane %v943_v13, 2  ;;  %v945_v6 = vpop.f32.mrb[7].mxu1 }
 0xe84   :  { %v951_v35 = vrot.slane %v945_v6, 2 }
 0xe85   :  { %v954_v17 = vadd.f32 %v950_v30, %v1703_v10  ;;  %v1292_v10 = vpack.c.bf16 %v990_v0, %v989_v43 }
 0xe86   :  { %v955_v37 = vadd.f32 %v951_v35, %v1708_v25 }
 0xe87   :  { %v1126_v31 = vmul.f32 -1.442695, %v954_v17  ;;  %1293 = vmatprep.subr.bf16.mxu0 %v1292_v10 }
 0xe88   :  { %1295 = vmatpush3.bf16.msra.mxu0 %v1292_v10  ;;  %v1127_v25 = vmul.f32 -1.442695, %v955_v37 }
 0xe89   :  { %1384 = vpow2.f32 %v1126_v31  ;;  %1297 = vmatprep.subr.bf16.mxu0 %v1296_v46 }
 0xe8c   :  { %1299 = vmatpush3.bf16.msra.mxu0 %v1296_v46 }
 0xe93   :  { %v1385_v33 = vpop.eup %1384 }
 0xe94   :  { %v959_v34 = vadd.f32 1.0, %v1385_v33 }
 0xe96   :  { %1386 = vrcp.f32 %v959_v34 }
 0xe97   :  { %1388 = vpow2.f32 %v1127_v25 }
 0xea0   :  { %v1387_v38 = vpop.eup %1386 }
 0xea1   :  { %v972_v18 = vmul.f32 %v1387_v38, %v955_v37  ;;  %v971_v40 = vmul.f32 %v1387_v38, %v969_v36  ;;  %v1389_v44 = vpop.eup %1388 }
 0xea2   :  { %v965_v9 = vadd.f32 1.0, %v1389_v44 }
 0xea3   :  { %974 = vrot.lane.b32.xlu0 %v972_v18, %s1496_s2 }
 0xea4   :  { %1390 = vrcp.f32 %v965_v9 }
 0xea7   :  { %423 = vrot.lane.b32.xlu0 %v1671_v47, %s1496_s2  ;;  %v993_v47 = vld [vmem:[#allocation8 + $0x30] sm:$0xff] }
 0xea8   :  { %v1300_v48 = vpack.c.bf16 %v994_v21, %v993_v47 }
 0xeaa   :  { %1301 = vmatprep.subr.bf16.mxu0 %v1300_v48 }
 0xeab   :  { %755 = vrot.lane.b32.xlu0 %v1726_v53, %s1496_s2  ;;  %1303 = vmatpush3.bf16.msra.mxu0 %v1300_v48 }
 0xeae   :  { %v1391_v50 = vpop.eup %1390 }
 0xf15   :  { %v975_v14 = vpop.permute.xlu0 %974 }
 0xf16   :  { %v977_v20 = vadd.f32 %v975_v14, %v971_v40 }
 0xf18   :  { %1392 = vtanh.f32 %v977_v20 }
 0xf19   :  { %v424_v24 = vpop.permute.xlu0 %423 }
 0xf1a   :  { %427 = vst.msk [vmem:[#allocation2] sm:$0x30] %vm426_vm4, %v424_v24 }
 0xf1d   :  { %v756_v49 = vpop.permute.xlu0 %755 }
 0xf1e   :  { %758 = vst.msk [vmem:[#allocation2 + $0x8] sm:$0xc] %vm312_vm2, %v756_v49 }
 0xf21   :  { %v985_v51 = vld [vmem:[#allocation2] sm:$0xff] }
 0xf22   :  { %v1393_v52 = vpop.eup %1392  ;;  %1157 = vmatprep.mubr.msk.f32.mxu0 %vm92_vm0, %v985_v51 }
 0xf23   :  { %v979_v53 = vmul.f32 %v1393_v52, %v1391_v50 }
 0xf25   :  { %981 = vrot.lane.b32.xlu0 %v979_v53, %s1496_s2 }
 0xf97   :  { %v982_v54 = vpop.permute.xlu0 %981 }
 0xf98   :  { %984 = vst.msk [vmem:[#allocation2 + $0x8] sm:$0xc0] %vm540_vm3, %v982_v54 }
 0xf9f   :  { %v986_v55 = vld [vmem:[#allocation2 + $0x8] sm:$0xff] }
 0xfa0   :  { %1158 = vmatmul.mubr.msk.f32.vlgmr.msra.gmra.mrb[10].mxu0 %vm92_vm0, %v986_v55 }
0x1073   :  { %v1159_v57 = vpop.f32.mrb[10].mxu0 }
0x1074   :  { %v1080_v58 = vadd.f32 %v1159_v57, %v1128_v56  ;;  %v1074_v59 = vpop.f32.mrb[11].mxu0 }
0x1075   :  { %v1075_v60 = vadd.f32 %v1128_v56, %v1074_v59 }
0x1076   :  { %1084 = vst [vmem:[#allocation9 + $0x8] sm:$0xff] %v1080_v58 }
0x1077   :  { %1083 = vst [vmem:[#allocation9] sm:$0xff] %v1075_v60 }
0x1078   :  { %1471 = shalt.err (!%p1468_p0)
}
0x1079   :  { %s1472_s4 = scalar_lea.hbm %s1780_s5, 256 }
0x107a   :  { %p1473_p1 = scmp.ne.s32.totalorder %s1780_s5, %s1472_s4  ;;  %p1476_p2 = scmp.lt.u32.totalorder %s1472_s4, %s1780_s5 }
0x107c   :  { %p1478_p3 = pnand %p1476_p2, %p1473_p1 }
0x107e   :  { %1481 = shalt.err (!%p1478_p3)
}
0x107f   :  { %1096 = dma.vmem_to_hbm [thread:$0]  %s1091_s10, 256, %s1780_s5, [#allocation5], %s1492_s1, %s1492_s1, %s1493_s17  }
0x1080   :  { %1486 = dma.done.wait [#allocation5], 256  }
0x1081   :  { %1487 = vsyncadd [#allocation5], 4294967040 }
0x1082   :  { %1100 = vsyncpa [#allocation4], 1 }
0x1083   :  { %1101 = vsyncpa [#allocation7], 1 }
0x1084   :  { %1102 = vsyncpa [#allocation5], 1 }

</bundles_post_ra>
